<compile_context>
chip_gen: v7x
topology: tpu7x:2x2x1
jax: 0.10.0
libtpu: 0.0.40
codegen_flags: <defaults>
</compile_context>

<pallas_src>
import functools

import jax
import jax.numpy as jnp
from jax.experimental import pallas as pl
from jax.experimental.pallas import tpu as pltpu

_NEG_BIG = -1e30  # finite "-inf" used to mask padded key columns


def _infonce_kernel(q_ref, p_ref, *rest, needs_mask):
    """Flash-style InfoNCE inner loop; grid = (query tiles, key tiles).

    Inputs are pre-normalized bf16 (1/temperature folded into the query side),
    so each step is one bf16 MXU matmul + an online logsumexp update.  Running
    max / sum-exp / positive logit live in VMEM scratch; on the last key tile
    the per-row (logsumexp - positive) is written out.
    """
    if needs_mask:
        bias_ref, out_ref, m_sc, l_sc, pos_sc = rest
    else:
        bias_ref = None
        out_ref, m_sc, l_sc, pos_sc = rest

    qi = pl.program_id(0)
    kk = pl.program_id(1)
    n_k = pl.num_programs(1)

    @pl.when(kk == 0)
    def _():
        m_sc[...] = jnp.full_like(m_sc, -jnp.inf)
        l_sc[...] = jnp.zeros_like(l_sc)
        pos_sc[...] = jnp.zeros_like(pos_sc)

    # logits = qn @ pn.T — contract last dims (no transpose materialized),
    # bf16 operands, f32 accumulation on the MXU.
    logits = jax.lax.dot_general(
        q_ref[...], p_ref[...],
        dimension_numbers=(((1,), (1,)), ((), ())),
        preferred_element_type=jnp.float32)

    # Positive (diagonal) logit from the f32 logits accumulator — only on the
    # diagonal tile, numerically consistent with the denominator, and no extra
    # (tb, D) multiply/reduce keeping wide temporaries alive.
    @pl.when(kk == qi)
    def _():
        r = jax.lax.broadcasted_iota(jnp.int32, logits.shape, 0)
        c = jax.lax.broadcasted_iota(jnp.int32, logits.shape, 1)
        pos_sc[...] = jnp.sum(jnp.where(r == c, logits, 0.0), axis=1,
                              keepdims=True)

    if needs_mask:
        # bias row: 0 for valid key columns, -1e30 for padded ones (nonzero
        # only on the last key tile) -> one vadd per vreg instead of a
        # per-step iota/compare/select.
        logits = logits + bias_ref[...]

    # Online logsumexp update.
    m_prev = m_sc[...]
    m_new = jnp.maximum(m_prev, jnp.max(logits, axis=1, keepdims=True))
    alpha = jnp.exp(m_prev - m_new)
    l_sc[...] = alpha * l_sc[...] + jnp.sum(jnp.exp(logits - m_new), axis=1,
                                            keepdims=True)
    m_sc[...] = m_new

    # Finalize this query tile: per-row (logsumexp - positive logit).
    @pl.when(kk == n_k - 1)
    def _():
        out_ref[...] = m_sc[...] + jnp.log(l_sc[...]) - pos_sc[...]


def infonce_loss_pallas(query, positive, temperature=0.05, block_b=None):
    """InfoNCE loss: query, positive are [B, D]; returns scalar float32 loss."""
    assert query.shape == positive.shape and query.ndim == 2
    B, D = query.shape
    inv_t = float(1.0 / temperature)

    # ---- one-time pre-normalization (plain XLA), done once per call --------
    # F.normalize(x, dim=1) == x * min(rsqrt(sum x^2), 1e12); fold 1/T into the
    # query side; feed the MXU bf16 (halves streamed bytes + fast MXU path).
    def _norm(x, scale):
        xf = x.astype(jnp.float32)
        inv = jnp.minimum(jax.lax.rsqrt(jnp.sum(xf * xf, axis=1, keepdims=True)),
                          1e12)
        return (xf * (inv * scale)).astype(jnp.bfloat16)

    qn = _norm(query, inv_t)
    pn = _norm(positive, 1.0)

    # ---- tiling -------------------------------------------------------------
    if block_b is None:
        block_b = 512 if D <= 2048 else 256   # smaller tiles for huge D (v7x VMEM)
    if B <= block_b:
        tb = B                                # single tile: block == full array
    else:
        tb = max(128, (block_b // 128) * 128)  # lane/sublane-friendly tile
    B_pad = pl.cdiv(B, tb) * tb
    needs_mask = B_pad != B
    if needs_mask:
        # pad the already-normalized bf16 arrays (half the bytes of padding f32)
        qn = jnp.pad(qn, ((0, B_pad - B), (0, 0)))
        pn = jnp.pad(pn, ((0, B_pad - B), (0, 0)))
    g = B_pad // tb

    in_specs = [
        pl.BlockSpec((tb, D), lambda qi, kk: (qi, 0)),   # normalized query (bf16)
        pl.BlockSpec((tb, D), lambda qi, kk: (kk, 0)),   # normalized positives (bf16)
    ]
    args = [qn, pn]
    if needs_mask:
        col = jnp.arange(B_pad, dtype=jnp.int32)
        col_bias = jnp.where(col < B, 0.0, _NEG_BIG).astype(jnp.float32)
        col_bias = col_bias.reshape(1, B_pad)
        in_specs.append(pl.BlockSpec((1, tb), lambda qi, kk: (0, kk)))
        args.append(col_bias)

    # Rough per-step VMEM: double-buffered bf16 input tiles + f32 (tb, tb)
    # logits/exp temporaries.  Only raise the scoped limit when needed; cap
    # well below v7x's 64 MiB physical VMEM so one setting runs everywhere.
    est = 2 * 2 * tb * D * 2 + 4 * tb * tb * 4
    vmem_limit = None
    if est > 24 * 1024 * 1024:
        vmem_limit = min(int(est * 3 // 2), 56 * 1024 * 1024)

    kernel = functools.partial(_infonce_kernel, needs_mask=needs_mask)

    per_row = pl.pallas_call(
        kernel,
        out_shape=jax.ShapeDtypeStruct((B_pad, 1), jnp.float32),
        grid=(g, g),
        in_specs=in_specs,
        out_specs=pl.BlockSpec((tb, 1), lambda qi, kk: (qi, 0)),
        scratch_shapes=[
            pltpu.VMEM((tb, 1), jnp.float32),   # running max
            pltpu.VMEM((tb, 1), jnp.float32),   # running sum-exp
            pltpu.VMEM((tb, 1), jnp.float32),   # positive logit
        ],
        compiler_params=pltpu.CompilerParams(
            dimension_semantics=("parallel", "arbitrary"),
            vmem_limit_bytes=vmem_limit),
    )(*args)

    # Padded rows are simply dropped here (no in-kernel row mask needed).
    return jnp.sum(per_row[:B, 0]) / B


def _infonce_ref(query, positive, temperature=0.05):
    # pure-JAX reference (PyTorch semantics, f32 throughout) for sanity checking
    q = query.astype(jnp.float32)
    p = positive.astype(jnp.float32)
    qn = q / jnp.maximum(jnp.linalg.norm(q, axis=1, keepdims=True), 1e-12)
    pn = p / jnp.maximum(jnp.linalg.norm(p, axis=1, keepdims=True), 1e-12)
    logits = jnp.dot(qn, pn.T, precision=jax.lax.Precision.HIGHEST) / temperature
    logp = jax.nn.log_softmax(logits, axis=1)
    idx = jnp.arange(q.shape[0])
    return -jnp.mean(logp[idx, idx])


if __name__ == "__main__":
    # Small case matching the module's forward signature.
    B, D = 8, 32
    kq, kp = jax.random.split(jax.random.PRNGKey(0))
    query = jax.random.normal(kq, (B, D), dtype=jnp.float32)
    positive = jax.random.normal(kp, (B, D), dtype=jnp.float32)

    loss = infonce_loss_pallas(query, positive, temperature=0.05)
    jax.block_until_ready(loss)
    ref = _infonce_ref(query, positive, temperature=0.05)
    # bf16 MXU path vs. f32 reference -> modest tolerance
    assert jnp.allclose(loss, ref, atol=2e-2, rtol=2e-2), (loss, ref)

    # Exercise the tiled path (2x2 grid) and the padded/masked path.
    for (Bt, Dt, blk) in [(256, 128, 128), (200, 128, 128)]:
        kq, kp = jax.random.split(jax.random.PRNGKey(Bt))
        qt = jax.random.normal(kq, (Bt, Dt), dtype=jnp.float32)
        pt = jax.random.normal(kp, (Bt, Dt), dtype=jnp.float32)
        lt = infonce_loss_pallas(qt, pt, temperature=0.05, block_b=blk)
        jax.block_until_ready(lt)
        rt = _infonce_ref(qt, pt, temperature=0.05)
        assert jnp.allclose(lt, rt, atol=2e-2, rtol=2e-2), (Bt, lt, rt)

    print("KERNEL_OK")
</pallas_src>

<mosaic_0001>
module attributes {stable_mosaic.version = 11 : i64} {
  func.func @_infonce_kernel(%arg0: i32, %arg1: i32, %arg2: memref<8x32xbf16, #tpu.memory_space<vmem>>, %arg3: memref<8x32xbf16, #tpu.memory_space<vmem>>, %arg4: memref<8x1xf32, #tpu.memory_space<vmem>>, %arg5: memref<8x1xf32, #tpu.memory_space<vmem>>, %arg6: memref<8x1xf32, #tpu.memory_space<vmem>>, %arg7: memref<8x1xf32, #tpu.memory_space<vmem>>) attributes {dimension_semantics = [#tpu.dimension_semantics<parallel>, #tpu.dimension_semantics<arbitrary>], iteration_bounds = array<i64: 1, 1>, scalar_prefetch = 0 : i64, scratch_operands = 3 : i64, tpu.core_type = #tpu.core_type<tc>, window_params = [{transform_indices = @transform_0, window_bounds = array<i64: 8, 32>}, {transform_indices = @transform_1, window_bounds = array<i64: 8, 32>}, {transform_indices = @transform_2, window_bounds = array<i64: 8, 1>}]} {
    %c0_i32 = arith.constant 0 : i32
    %0 = arith.cmpi eq, %arg1, %c0_i32 : i32
    %1 = arith.extui %0 : i1 to i32
    %c0_i32_0 = arith.constant 0 : i32
    %2 = arith.cmpi ne, %1, %c0_i32_0 : i32
    scf.if %2 {
      %cst_17 = arith.constant 0xFF800000 : f32
      %28 = vector.broadcast %cst_17 : f32 to vector<8x1xf32>
      %c0_18 = arith.constant 0 : index
      %c0_19 = arith.constant 0 : index
      %29 = vector.load %arg5[%c0_18, %c0_19] : memref<8x1xf32, #tpu.memory_space<vmem>>, vector<8x1xf32>
      tpu.vector_store %arg5[%c0_18, %c0_19], %28 {strides = array<i32>} : memref<8x1xf32, #tpu.memory_space<vmem>>, vector<8x1xf32>,
      %cst_20 = arith.constant 0.000000e+00 : f32
      %30 = vector.broadcast %cst_20 : f32 to vector<8x1xf32>
      %c0_21 = arith.constant 0 : index
      %c0_22 = arith.constant 0 : index
      %31 = vector.load %arg6[%c0_21, %c0_22] : memref<8x1xf32, #tpu.memory_space<vmem>>, vector<8x1xf32>
      tpu.vector_store %arg6[%c0_21, %c0_22], %30 {strides = array<i32>} : memref<8x1xf32, #tpu.memory_space<vmem>>, vector<8x1xf32>,
      %cst_23 = arith.constant 0.000000e+00 : f32
      %32 = vector.broadcast %cst_23 : f32 to vector<8x1xf32>
      %c0_24 = arith.constant 0 : index
      %c0_25 = arith.constant 0 : index
      %33 = vector.load %arg7[%c0_24, %c0_25] : memref<8x1xf32, #tpu.memory_space<vmem>>, vector<8x1xf32>
      tpu.vector_store %arg7[%c0_24, %c0_25], %32 {strides = array<i32>} : memref<8x1xf32, #tpu.memory_space<vmem>>, vector<8x1xf32>,
    } else {
    }
    %c0 = arith.constant 0 : index
    %c0_1 = arith.constant 0 : index
    %3 = vector.load %arg2[%c0, %c0_1] : memref<8x32xbf16, #tpu.memory_space<vmem>>, vector<8x32xbf16>
    %c0_2 = arith.constant 0 : index
    %c0_3 = arith.constant 0 : index
    %4 = vector.load %arg3[%c0_2, %c0_3] : memref<8x32xbf16, #tpu.memory_space<vmem>>, vector<8x32xbf16>
    %cst = arith.constant dense<0.000000e+00> : vector<8x8xf32>
    %5 = tpu.matmul %3, %4, %cst {dimension_numbers = #tpu.dot_dimension_numbers<[1], [1], [0], [0], [0, 0, 1, 0], [], []>} : vector<8x32xbf16>, vector<8x32xbf16>, vector<8x8xf32> -> vector<8x8xf32>
    %6 = arith.cmpi eq, %arg1, %arg0 : i32
    %7 = arith.extui %6 : i1 to i32
    %c0_i32_4 = arith.constant 0 : i32
    %8 = arith.cmpi ne, %7, %c0_i32_4 : i32
    scf.if %8 {
      %28 = tpu.iota {dimensions = array<i32: 0>} : vector<8x8xi32>
      %29 = tpu.iota {dimensions = array<i32: 1>} : vector<8x8xi32>
      %30 = arith.cmpi eq, %28, %29 : vector<8x8xi32>
      %cst_17 = arith.constant 0.000000e+00 : f32
      %31 = vector.broadcast %cst_17 : f32 to vector<8x8xf32>
      %32 = arith.select %30, %5, %31 : vector<8x8xi1>, vector<8x8xf32>
      %cst_18 = arith.constant dense<0.000000e+00> : vector<8xf32>
      %33 = vector.multi_reduction <add>, %32, %cst_18 [1] : vector<8x8xf32> to vector<8xf32>
      %34 = vector.shape_cast %33 : vector<8xf32> to vector<8x1xf32>
      %c0_19 = arith.constant 0 : index
      %c0_20 = arith.constant 0 : index
      %35 = vector.load %arg7[%c0_19, %c0_20] : memref<8x1xf32, #tpu.memory_space<vmem>>, vector<8x1xf32>
      tpu.vector_store %arg7[%c0_19, %c0_20], %34 {strides = array<i32>} : memref<8x1xf32, #tpu.memory_space<vmem>>, vector<8x1xf32>,
    } else {
    }
    %c0_5 = arith.constant 0 : index
    %c0_6 = arith.constant 0 : index
    %9 = vector.load %arg5[%c0_5, %c0_6] : memref<8x1xf32, #tpu.memory_space<vmem>>, vector<8x1xf32>
    %cst_7 = arith.constant dense<0xFF800000> : vector<8xf32>
    %10 = vector.multi_reduction <maximumf>, %5, %cst_7 [1] : vector<8x8xf32> to vector<8xf32>
    %11 = vector.shape_cast %10 : vector<8xf32> to vector<8x1xf32>
    %12 = arith.maximumf %9, %11 : vector<8x1xf32>
    %13 = arith.subf %9, %12 : vector<8x1xf32>
    %14 = math.exp %13 : vector<8x1xf32>
    %c0_8 = arith.constant 0 : index
    %c0_9 = arith.constant 0 : index
    %15 = vector.load %arg6[%c0_8, %c0_9] : memref<8x1xf32, #tpu.memory_space<vmem>>, vector<8x1xf32>
    %16 = arith.mulf %14, %15 : vector<8x1xf32>
    %17 = vector.broadcast %12 : vector<8x1xf32> to vector<8x8xf32>
    %18 = arith.subf %5, %17 : vector<8x8xf32>
    %19 = math.exp %18 : vector<8x8xf32>
    %cst_10 = arith.constant dense<0.000000e+00> : vector<8xf32>
    %20 = vector.multi_reduction <add>, %19, %cst_10 [1] : vector<8x8xf32> to vector<8xf32>
    %21 = vector.shape_cast %20 : vector<8xf32> to vector<8x1xf32>
    %22 = arith.addf %16, %21 : vector<8x1xf32>
    %c0_11 = arith.constant 0 : index
    %c0_12 = arith.constant 0 : index
    %23 = vector.load %arg6[%c0_11, %c0_12] : memref<8x1xf32, #tpu.memory_space<vmem>>, vector<8x1xf32>
    tpu.vector_store %arg6[%c0_11, %c0_12], %22 {strides = array<i32>} : memref<8x1xf32, #tpu.memory_space<vmem>>, vector<8x1xf32>,
    %c0_13 = arith.constant 0 : index
    %c0_14 = arith.constant 0 : index
    %24 = vector.load %arg5[%c0_13, %c0_14] : memref<8x1xf32, #tpu.memory_space<vmem>>, vector<8x1xf32>
    tpu.vector_store %arg5[%c0_13, %c0_14], %12 {strides = array<i32>} : memref<8x1xf32, #tpu.memory_space<vmem>>, vector<8x1xf32>,
    %c0_i32_15 = arith.constant 0 : i32
    %25 = arith.cmpi eq, %arg1, %c0_i32_15 : i32
    %26 = arith.extui %25 : i1 to i32
    %c0_i32_16 = arith.constant 0 : i32
    %27 = arith.cmpi ne, %26, %c0_i32_16 : i32
    scf.if %27 {
      %c0_17 = arith.constant 0 : index
      %c0_18 = arith.constant 0 : index
      %28 = vector.load %arg5[%c0_17, %c0_18] : memref<8x1xf32, #tpu.memory_space<vmem>>, vector<8x1xf32>
      %c0_19 = arith.constant 0 : index
      %c0_20 = arith.constant 0 : index
      %29 = vector.load %arg6[%c0_19, %c0_20] : memref<8x1xf32, #tpu.memory_space<vmem>>, vector<8x1xf32>
      %30 = math.log %29 : vector<8x1xf32>
      %31 = arith.addf %28, %30 : vector<8x1xf32>
      %c0_21 = arith.constant 0 : index
      %c0_22 = arith.constant 0 : index
      %32 = vector.load %arg7[%c0_21, %c0_22] : memref<8x1xf32, #tpu.memory_space<vmem>>, vector<8x1xf32>
      %33 = arith.subf %31, %32 : vector<8x1xf32>
      %c0_23 = arith.constant 0 : index
      %c0_24 = arith.constant 0 : index
      %34 = vector.load %arg4[%c0_23, %c0_24] : memref<8x1xf32, #tpu.memory_space<vmem>>, vector<8x1xf32>
      tpu.vector_store %arg4[%c0_23, %c0_24], %33 {strides = array<i32>} : memref<8x1xf32, #tpu.memory_space<vmem>>, vector<8x1xf32>,
    } else {
    }
    return
  }
  func.func @transform_0(%arg0: i32, %arg1: i32) -> (i32, i32) {
    %c0_i32 = arith.constant 0 : i32
    %c0_i32_0 = arith.constant 0 : i32
    return %arg0, %c0_i32 : i32, i32
  }
  func.func @transform_1(%arg0: i32, %arg1: i32) -> (i32, i32) {
    %c0_i32 = arith.constant 0 : i32
    %c0_i32_0 = arith.constant 0 : i32
    return %arg1, %c0_i32 : i32, i32
  }
  func.func @transform_2(%arg0: i32, %arg1: i32) -> (i32, i32) {
    %c0_i32 = arith.constant 0 : i32
    %c0_i32_0 = arith.constant 0 : i32
    return %arg0, %c0_i32 : i32, i32
  }
}

</mosaic_0001>

<bundles_post_ra>
// kernel: tpu_custom_call.1
= control target key start
LH: loop header
LB: loop body
LE: loop exit
PB: predicated region body
PF: predicated region fallthrough
CT: control target
= control target key end

     0   :  { %7 = vsyncpa [#allocation6], 0  ;;  %s280_s0 = inlined_call_operand.hbm [shape: bf16[8,32], index: 0, kind: input, shape index: {}]   ;;  %s281_s1 = inlined_call_operand.hbm [shape: bf16[8,32], index: 1, kind: input, shape index: {}]   ;;  %s282_s2 = inlined_call_operand.vmem [shape: f32[8,1], index: 2, kind: output, shape index: {}]  }
   0x1   :  { %8 = vsyncpa [#allocation8], 0  ;;  %s222_s9 = smov [#allocation5]   ;;  %s223_s11 = smov [#allocation7]  }
   0x2   :  { %s15_s10 = sshll.u32 %s222_s9, 4  ;;  %s25_s12 = sshll.u32 %s223_s11, 4  ;;  %s16_s10 = int_to_ptr.vmem [resolvable:$true] %s15_s10  ;;  %s26_s12 = int_to_ptr.vmem [resolvable:$true] %s25_s12 }
   0x3   :  { %s174_s15 = scalar_lea.hbm %s280_s0, 64 }
   0x4   :  { %p175_p0 = scmp.ne.s32.totalorder %s280_s0, %s174_s15  ;;  %p178_p1 = scmp.lt.u32.totalorder %s174_s15, %s280_s0 }
   0x6   :  { %p180_p2 = pnand %p178_p1, %p175_p0 }
   0x8   :  { %183 = shalt.err (!%p180_p2)
}
   0x9   :  { %s184_s20 = scalar_lea.vmem %s16_s10, 64  ;;  %p189_p4 = scmp.lt.s32.totalorder %s16_s10, %s16_s10 }
   0xa   :  { %p185_p3 = scmp.ne.s32.totalorder %s16_s10, %s184_s20  ;;  %p190_p5 = scmp.lt.s32.totalorder %s184_s20, %s184_s20 }
   0xc   :  { %p191_p6 = por %p190_p5, %p189_p4 }
   0xe   :  { %p192_p7 = pnand %p191_p6, %p185_p3 }
  0x10   :  { %195 = shalt.err (!%p192_p7)
}
  0x11   :  { %18 = dma.hbm_to_vmem [thread:$0]  %s280_s0, 64, %s16_s10, [#allocation6]  }
  0x12   :  { %s196_s25 = scalar_lea.hbm %s281_s1, 64 }
  0x13   :  { %p197_p8 = scmp.ne.s32.totalorder %s281_s1, %s196_s25  ;;  %p200_p9 = scmp.lt.u32.totalorder %s196_s25, %s281_s1 }
  0x15   :  { %p202_p10 = pnand %p200_p9, %p197_p8 }
  0x17   :  { %205 = shalt.err (!%p202_p10)
}
  0x18   :  { %s206_s30 = scalar_lea.vmem %s26_s12, 64  ;;  %p211_p12 = scmp.lt.s32.totalorder %s26_s12, %s26_s12 }
  0x19   :  { %p207_p11 = scmp.ne.s32.totalorder %s26_s12, %s206_s30  ;;  %p212_p13 = scmp.lt.s32.totalorder %s206_s30, %s206_s30 }
  0x1b   :  { %p213_p0 = por %p212_p13, %p211_p12 }
  0x1d   :  { %p214_p1 = pnand %p213_p0, %p207_p11 }
  0x1f   :  { %217 = shalt.err (!%p214_p1)
}
  0x20   :  { %28 = dma.hbm_to_vmem [thread:$0]  %s281_s1, 64, %s26_s12, [#allocation8]  }
  0x21   :  { %218 = dma.done.wait [#allocation6], 64  }
  0x22   :  { %219 = vsyncadd [#allocation6], 4294967232 }
  0x23   :  { %220 = dma.done.wait [#allocation8], 64  }
  0x24   :  { %221 = vsyncadd [#allocation8], 4294967232  ;;  %vm40_vm0 = vcmask 7168   ;;  %v224_v0 = vmov 0.0   ;;  %vm225_vm1 = vmmov 0   ;;  %vm46_vm2 = vcmask 261120  }
  0x25   :  { %42 = vst.msk [vmem:[#allocation3] sm:$0xff] %vm40_vm0, %v224_v0  ;;  %155 = vmatprep.subr.bf16.mxu0 %v224_v0  ;;  %43 = vst.msk [vmem:[#allocation4] sm:$0xff] %vm40_vm0, %v224_v0  ;;  %157 = vmatprep.mubr.msk.bf16.mxu0 %vm225_vm1, %v224_v0  ;;  %v45_v1 = vld [vmem:[#allocation7] sm:$0xf]  ;;  %v44_v3 = vld [vmem:[#allocation5] sm:$0xf]  ;;  %v97_v18 = vlaneseq }
  0x26   :  { %v51_v2 = vsel %vm46_vm2, %v45_v1, 0  ;;  %v226_v4 = vmov -inf   ;;  %vm103_vm3 = vcmask 64512   ;;  %v227_v10 = vmov 0  }
  0x27   :  { %156 = vmatpush3.bf16.xpose.msra.mxu0 %v51_v2  ;;  %41 = vst.msk [vmem:[#allocation2] sm:$0xff] %vm40_vm0, %v226_v4  ;;  %167 = vset.pattern.permute.xlu0 %v227_v10  ;;  %v98_v19 = vshrl.u32 %v97_v18, 7  ;;  %v100_v20 = vand.u32 127, %v97_v18 }
  0x29   :  { %vm101_vm4 = vcmp.eq.s32.totalorder %v98_v19, %v100_v20 }
  0x2c   :  { %v118_v27 = vld [vmem:[#allocation3] sm:$0xff] }
  0x2e   :  { %158 = vmatmul.mubr.msk.bf16.vlgmr.msra.gmra.mrb[0].mxu0 %vm46_vm2, %v44_v3  ;;  %v109_v11 = vld [vmem:[#allocation2] sm:$0xff] }
 0x101   :  { %v87_v5 = vpop.f32.mrb[0].mxu0 }
 0x102   :  { %v159_v6 = vpop.f32.mrb[1].mxu0  ;;  %v111_v7 = vsel %vm103_vm3, %v87_v5, -inf  ;;  %v102_v23 = vsel %vm101_vm4, %v87_v5, 0.0 }
 0x103   :  { %112 = vmax.xlane.f32.xlu0 %v111_v7  ;;  %v90_v8 = vpop.f32.mrb[2].mxu0  ;;  %v104_v24 = vsel %vm103_vm3, %v102_v23, 0.0 }
 0x104   :  { %v160_v9 = vpop.f32.mrb[3].mxu0 }
 0x190   :  { %v113_v12 = vpop.xlane.xlu0 %112 }
 0x191   :  { %v114_v13 = vmax.f32 %v109_v11, %v113_v12 }
 0x193   :  { %v115_v14 = vsub.f32 %v109_v11, %v114_v13  ;;  %134 = vst.msk [vmem:[#allocation2] sm:$0xff] %vm40_vm0, %v114_v13  ;;  %122 = vperm.xlu0 %167, %v114_v13  }
 0x195   :  { %v116_v25 = vmul.f32 1.442695, %v115_v14 }
 0x19a   :  { %v138_v35 = vld [vmem:[#allocation2] sm:$0xff] }
 0x212   :  { %v123_v15 = vpop.permute.xlu0 %122 }
 0x213   :  { %v125_v16 = vsub.f32 %v87_v5, %v123_v15 }
 0x215   :  { %v126_v17 = vmul.f32 1.442695, %v125_v16 }
 0x217   :  { %168 = vpow2.f32 %v126_v17 }
 0x218   :  { %170 = vpow2.f32 %v116_v25 }
 0x221   :  { %v169_v21 = vpop.eup %168 }
 0x222   :  { %v128_v22 = vsel %vm103_vm3, %v169_v21, 0.0  ;;  %v171_v26 = vpop.eup %170 }
 0x223   :  { %129 = vadd.xlane.f32.xlu1 %v128_v22  ;;  %v119_v28 = vmul.f32 %v171_v26, %v118_v27 }
 0x227   :  { %105 = vadd.xlane.f32.xlu1 %v104_v24 }
 0x2b0   :  { %v130_v29 = vpop.xlane.xlu1 %129 }
 0x2b1   :  { %v131_v30 = vadd.f32 %v130_v29, %v119_v28 }
 0x2b3   :  { %133 = vst.msk [vmem:[#allocation3] sm:$0xff] %vm40_vm0, %v131_v30 }
 0x2b4   :  { %v106_v31 = vpop.xlane.xlu1 %105 }
 0x2b5   :  { %108 = vst.msk [vmem:[#allocation4] sm:$0xff] %vm40_vm0, %v106_v31 }
 0x2ba   :  { %v139_v32 = vld [vmem:[#allocation3] sm:$0xff] }
 0x2bb   :  { %172 = vlog2.f32 %v139_v32 }
 0x2bc   :  { %v143_v37 = vld [vmem:[#allocation4] sm:$0xff] }
 0x2c5   :  { %v173_v33 = vpop.eup %172 }
 0x2c6   :  { %v141_v34 = vmul.f32 0.6931472, %v173_v33 }
 0x2c8   :  { %v142_v36 = vadd.f32 %v141_v34, %v138_v35 }
 0x2ca   :  { %v144_v38 = vsub.f32 %v142_v36, %v143_v37 }
 0x2cc   :  { %145 = vst.msk [vmem:[%s282_s2] sm:$0xff] %vm40_vm0, %v144_v38 }
 0x2cd   :  { %150 = vsyncpa [#allocation6], 1 }
 0x2ce   :  { %151 = vsyncpa [#allocation8], 1 }

</bundles_post_ra>
